<compile_context>
chip_gen: v7x
topology: tpu7x:2x2x1
jax: 0.10.0
libtpu: 0.0.40
codegen_flags: <defaults>
</compile_context>

<pallas_src>
import math
import functools

import jax
import jax.numpy as jnp
import numpy as np
from jax.experimental import pallas as pl
from jax.experimental.pallas import tpu as pltpu


def _arcmargin_kernel(emb_ref, w_ref, label_ref, out_ref, wn_ref, *,
                      cos_m, sin_m, mm, threshold, s, eps, easy_margin,
                      emb_resident):
    # emb_ref:   (B, E) resident embeddings (DMA'd once)  OR  (tb, E) streamed
    # w_ref:     (tc, E) raw f32 class-weight tile (resident across inner axis)
    # label_ref: (tb, 1) int32 class label per row
    # out_ref:   (tb, tc) scaled logits tile
    # wn_ref:    (tc, E) VMEM scratch: normalized weight tile (compute dtype)
    tb, tc = out_ref.shape

    # Re-normalize the weight tile only when the weight block changes: the
    # inner (batch) grid axis restarts at 0 for every new class tile, which
    # also holds per-core when the outer axis is sharded across TensorCores.
    @pl.when(pl.program_id(1) == 0)
    def _():
        w = w_ref[...].astype(jnp.float32)
        # F.normalize: x / max(||x||, 1e-12) == x * rsqrt(max(sumsq, 1e-24))
        inv_wn = jax.lax.rsqrt(
            jnp.maximum(jnp.sum(w * w, axis=-1, keepdims=True), 1e-24))
        wn_ref[...] = (w * inv_wn).astype(wn_ref.dtype)

    # (tb, E) slice of the embeddings.
    if emb_resident:
        row0 = pl.multiple_of(pl.program_id(1) * tb, tb)
        emb = emb_ref[pl.ds(row0, tb), :].astype(jnp.float32)
    else:
        emb = emb_ref[...].astype(jnp.float32)

    # Normalize the embedding operand before the matmul (cheaper than scaling
    # the (tb, tc) result when tc > E), then cast to the MXU operand dtype.
    inv_en = jax.lax.rsqrt(
        jnp.maximum(jnp.sum(emb * emb, axis=-1, keepdims=True), 1e-24))
    emb_n = (emb * inv_en).astype(wn_ref.dtype)

    # (tb, E) . (tc, E) contracted on E -> (tb, tc); MXU, f32 accumulation,
    # no transpose copy of the weight tile.
    cosine = jax.lax.dot_general(
        emb_n, wn_ref[...],
        dimension_numbers=(((1,), (1,)), ((), ())),
        preferred_element_type=jnp.float32)
    cosine = jnp.clip(cosine, -1.0 + eps, 1.0 - eps)

    sine = jnp.sqrt(1.0 - cosine * cosine)
    phi = cosine * cos_m - sine * sin_m
    if easy_margin:
        phi = jnp.where(cosine > 0.0, phi, cosine)
    else:
        phi = jnp.where(cosine > threshold, phi, cosine - mm)

    # One-hot mask from integer labels: subtract the tile offset from the
    # (tb, 1) labels instead of adding it to the full (tb, tc) iota.
    rel = label_ref[...] - pl.program_id(0) * tc           # (tb, 1) int32
    col = jax.lax.broadcasted_iota(jnp.int32, (tb, tc), 1)
    mask = rel == col

    out_ref[...] = (jnp.where(mask, phi, cosine) * s).astype(out_ref.dtype)


def arcmargin_forward(embeddings, weight, labels, *,
                      s=64.0, m=0.5, easy_margin=False, eps=1e-6,
                      tb=256, tc=1024, compute_dtype=jnp.bfloat16,
                      out_dtype=jnp.float32):
    """ArcFace margin logits.

    embeddings: (B, E) float32
    weight:     (C, E) float32
    labels:     (B,)   integer class id per row (equivalent to the original
                       module's one-hot `label_onehot` with one true per row)
    returns:    (B, C) out_dtype (float32 by default)
    """
    B, E = embeddings.shape
    C, E2 = weight.shape
    assert E == E2
    tb = min(tb, B)
    tc = min(tc, C)
    # NOTE: non-divisible B/C would need padding + masked epilogue; not needed
    # for the shapes exercised here.
    assert B % tb == 0 and C % tc == 0, "B/C must be divisible by tb/tc"
    assert tb == B or tb % 8 == 0
    assert tc == C or tc % 128 == 0

    labels2d = labels.astype(jnp.int32).reshape(B, 1)

    # --- VMEM budgeting: decide embedding residency, add headroom. ---------
    cd = jnp.dtype(compute_dtype).itemsize
    od = jnp.dtype(out_dtype).itemsize
    base = (2 * tc * E * 4                      # weight tiles (double-buffered)
            + tc * E * cd                       # normalized-weight scratch
            + 2 * tb * tc * od                  # output tiles
            + 2 * tb * 128 * 4)                 # labels tiles (lane-padded)
    resident_bytes = 2 * B * E * 4              # resident (B, E) block (worst case)
    streamed_bytes = 2 * tb * E * 4
    headroom = 4 << 20
    budget = 24 << 20                           # fits v7x's 32 MiB scoped default
    emb_resident = (base + resident_bytes + headroom) <= budget

    vmem_need = base + (resident_bytes if emb_resident else streamed_bytes) + headroom
    vmem_limit = int(vmem_need) if vmem_need > (32 << 20) else None

    kernel = functools.partial(
        _arcmargin_kernel,
        cos_m=math.cos(m),
        sin_m=math.sin(m),
        mm=math.sin(math.pi - m) * m,
        threshold=math.cos(math.pi - m),
        s=s,
        eps=eps,
        easy_margin=easy_margin,
        emb_resident=emb_resident,
    )

    # Class/weight tiles outer (resident + parallel), batch tiles inner.
    grid = (C // tc, B // tb)

    if emb_resident:
        emb_spec = pl.BlockSpec((B, E), lambda j, i: (0, 0))    # DMA'd once
        emb_stream_factor = 1
    else:
        emb_spec = pl.BlockSpec((tb, E), lambda j, i: (i, 0))   # streamed
        emb_stream_factor = C // tc

    cost = pl.CostEstimate(
        flops=2 * B * C * E,
        transcendentals=B * C + B * (C // tc) + C,
        bytes_accessed=4 * (C * E + B * E * emb_stream_factor) + B * C * od + B * 4,
    )

    return pl.pallas_call(
        kernel,
        out_shape=jax.ShapeDtypeStruct((B, C), out_dtype),
        grid_spec=pltpu.PrefetchScalarGridSpec(
            num_scalar_prefetch=0,
            grid=grid,
            in_specs=[
                emb_spec,                                       # embeddings
                pl.BlockSpec((tc, E), lambda j, i: (j, 0)),     # weight tile
                pl.BlockSpec((tb, 1), lambda j, i: (i, 0)),     # labels tile
            ],
            out_specs=pl.BlockSpec((tb, tc), lambda j, i: (i, j)),
            scratch_shapes=[pltpu.VMEM((tc, E), compute_dtype)],  # normalized W
        ),
        compiler_params=pltpu.CompilerParams(
            dimension_semantics=("parallel", "arbitrary"),
            vmem_limit_bytes=vmem_limit),
        cost_estimate=cost,
    )(embeddings, weight, labels2d)


def arcmargin_reference(embeddings, weight, label_onehot, *,
                        s=64.0, m=0.5, easy_margin=False, eps=1e-6):
    def l2norm(x):
        n = jnp.maximum(jnp.linalg.norm(x, axis=-1, keepdims=True), 1e-12)
        return x / n
    cosine = jnp.clip(l2norm(embeddings) @ l2norm(weight).T,
                      -1.0 + eps, 1.0 - eps)
    sine = jnp.sqrt(1.0 - cosine ** 2)
    phi = cosine * math.cos(m) - sine * math.sin(m)
    if easy_margin:
        phi = jnp.where(cosine > 0, phi, cosine)
    else:
        phi = jnp.where(cosine > math.cos(math.pi - m), phi,
                        cosine - math.sin(math.pi - m) * m)
    return jnp.where(label_onehot != 0, phi, cosine) * s


if __name__ == "__main__":
    # Small shapes consistent with the module (embedding_size / classnum scaled
    # down); tiles chosen so the grid is 2x2 and exercises the resident
    # embedding slicing, weight-tile caching and per-tile label offsets.
    B, E, C = 64, 128, 512

    key = jax.random.PRNGKey(0)
    k_emb, k_w, k_lbl = jax.random.split(key, 3)

    embeddings = jax.random.normal(k_emb, (B, E), dtype=jnp.float32)

    # Xavier-uniform init for weight of shape (classnum, embedding_size).
    bound = math.sqrt(6.0 / (C + E))
    weight = jax.random.uniform(k_w, (C, E), dtype=jnp.float32,
                                minval=-bound, maxval=bound)

    labels = jax.random.randint(k_lbl, (B,), 0, C, dtype=jnp.int32)

    out = arcmargin_forward(embeddings, weight, labels, tb=32, tc=256)
    out = jax.block_until_ready(out)

    label_onehot = jax.nn.one_hot(labels, C, dtype=jnp.float32)
    ref = arcmargin_reference(embeddings, weight, label_onehot)
    # bf16 MXU operands (f32 accumulate): expect ~1e-3-level cosine error,
    # scaled by s=64 -> relaxed tolerances vs. the pure-f32 reference.
    np.testing.assert_allclose(np.asarray(out), np.asarray(ref),
                               rtol=2e-2, atol=2.5e-1)

    # Also sanity-check the exact f32 compute path against the reference.
    out_f32 = jax.block_until_ready(
        arcmargin_forward(embeddings, weight, labels, tb=32, tc=256,
                          compute_dtype=jnp.float32))
    np.testing.assert_allclose(np.asarray(out_f32), np.asarray(ref),
                               rtol=1e-5, atol=1e-4)

    print("KERNEL_OK")
</pallas_src>

<mosaic_0001>
module attributes {stable_mosaic.version = 11 : i64} {
  func.func @_arcmargin_kernel(%arg0: i32, %arg1: i32, %arg2: memref<64x128xf32, #tpu.memory_space<vmem>>, %arg3: memref<256x128xf32, #tpu.memory_space<vmem>>, %arg4: memref<32x1xi32, #tpu.memory_space<vmem>>, %arg5: memref<32x256xf32, #tpu.memory_space<vmem>>, %arg6: memref<256x128xbf16, #tpu.memory_space<vmem>>) attributes {dimension_semantics = [#tpu.dimension_semantics<parallel>, #tpu.dimension_semantics<arbitrary>], iteration_bounds = array<i64: 2, 2>, scalar_prefetch = 0 : i64, scratch_operands = 1 : i64, tpu.core_type = #tpu.core_type<tc>, window_params = [{pipeline_mode = #tpu.pipeline_mode<synchronous>, transform_indices = @transform_0, window_bounds = array<i64: 64, 128>}, {transform_indices = @transform_1, window_bounds = array<i64: 256, 128>}, {transform_indices = @transform_2, window_bounds = array<i64: 32, 1>}, {transform_indices = @transform_3, window_bounds = array<i64: 32, 256>}]} {
    %c0_i32 = arith.constant 0 : i32
    %0 = arith.cmpi eq, %arg1, %c0_i32 : i32
    %1 = arith.extui %0 : i1 to i32
    %c0_i32_0 = arith.constant 0 : i32
    %2 = arith.cmpi ne, %1, %c0_i32_0 : i32
    scf.if %2 {
      %c0_17 = arith.constant 0 : index
      %c0_18 = arith.constant 0 : index
      %47 = vector.load %arg3[%c0_17, %c0_18] : memref<256x128xf32, #tpu.memory_space<vmem>>, vector<256x128xf32>
      %48 = arith.mulf %47, %47 : vector<256x128xf32>
      %cst_19 = arith.constant dense<0.000000e+00> : vector<256xf32>
      %49 = vector.multi_reduction <add>, %48, %cst_19 [1] : vector<256x128xf32> to vector<256xf32>
      %50 = vector.shape_cast %49 : vector<256xf32> to vector<256x1xf32>
      %cst_20 = arith.constant 1.000000e-24 : f32
      %51 = vector.broadcast %cst_20 : f32 to vector<256x1xf32>
      %52 = arith.maximumf %50, %51 : vector<256x1xf32>
      %53 = math.rsqrt %52 : vector<256x1xf32>
      %54 = vector.broadcast %53 : vector<256x1xf32> to vector<256x128xf32>
      %55 = arith.mulf %47, %54 : vector<256x128xf32>
      %56 = arith.truncf %55 : vector<256x128xf32> to vector<256x128xbf16>
      %c0_21 = arith.constant 0 : index
      %c0_22 = arith.constant 0 : index
      %57 = vector.load %arg6[%c0_21, %c0_22] : memref<256x128xbf16, #tpu.memory_space<vmem>>, vector<256x128xbf16>
      tpu.vector_store %arg6[%c0_21, %c0_22], %56 {strides = array<i32>} : memref<256x128xbf16, #tpu.memory_space<vmem>>, vector<256x128xbf16>,
    } else {
    }
    %c32_i32 = arith.constant 32 : i32
    %3 = arith.muli %arg1, %c32_i32 : i32
    %4 = tpu.assume_multiple %3, 32 : i32
    %5 = arith.index_cast %4 : i32 to index
    %c0 = arith.constant 0 : index
    %6 = vector.load %arg2[%5, %c0] : memref<64x128xf32, #tpu.memory_space<vmem>>, vector<32x128xf32>
    %7 = arith.mulf %6, %6 : vector<32x128xf32>
    %cst = arith.constant dense<0.000000e+00> : vector<32xf32>
    %8 = vector.multi_reduction <add>, %7, %cst [1] : vector<32x128xf32> to vector<32xf32>
    %9 = vector.shape_cast %8 : vector<32xf32> to vector<32x1xf32>
    %cst_1 = arith.constant 1.000000e-24 : f32
    %10 = vector.broadcast %cst_1 : f32 to vector<32x1xf32>
    %11 = arith.maximumf %9, %10 : vector<32x1xf32>
    %12 = math.rsqrt %11 : vector<32x1xf32>
    %13 = vector.broadcast %12 : vector<32x1xf32> to vector<32x128xf32>
    %14 = arith.mulf %6, %13 : vector<32x128xf32>
    %15 = arith.truncf %14 : vector<32x128xf32> to vector<32x128xbf16>
    %c0_2 = arith.constant 0 : index
    %c0_3 = arith.constant 0 : index
    %16 = vector.load %arg6[%c0_2, %c0_3] : memref<256x128xbf16, #tpu.memory_space<vmem>>, vector<256x128xbf16>
    %cst_4 = arith.constant dense<0.000000e+00> : vector<32x256xf32>
    %17 = tpu.matmul %15, %16, %cst_4 {dimension_numbers = #tpu.dot_dimension_numbers<[1], [1], [0], [0], [0, 0, 1, 0], [], []>} : vector<32x128xbf16>, vector<256x128xbf16>, vector<32x256xf32> -> vector<32x256xf32>
    %cst_5 = arith.constant -0.999998986 : f32
    %cst_6 = arith.constant 0.999998986 : f32
    %18 = vector.broadcast %cst_5 : f32 to vector<32x256xf32>
    %19 = arith.maximumf %18, %17 : vector<32x256xf32>
    %20 = vector.broadcast %cst_6 : f32 to vector<32x256xf32>
    %21 = arith.minimumf %20, %19 : vector<32x256xf32>
    %22 = arith.mulf %21, %21 : vector<32x256xf32>
    %cst_7 = arith.constant 1.000000e+00 : f32
    %23 = vector.broadcast %cst_7 : f32 to vector<32x256xf32>
    %24 = arith.subf %23, %22 : vector<32x256xf32>
    %25 = math.sqrt %24 : vector<32x256xf32>
    %cst_8 = arith.constant 0.87758255 : f32
    %26 = vector.broadcast %cst_8 : f32 to vector<32x256xf32>
    %27 = arith.mulf %21, %26 : vector<32x256xf32>
    %cst_9 = arith.constant 0.47942555 : f32
    %28 = vector.broadcast %cst_9 : f32 to vector<32x256xf32>
    %29 = arith.mulf %25, %28 : vector<32x256xf32>
    %30 = arith.subf %27, %29 : vector<32x256xf32>
    %cst_10 = arith.constant -0.87758255 : f32
    %31 = vector.broadcast %cst_10 : f32 to vector<32x256xf32>
    %32 = arith.cmpf ogt, %21, %31 : vector<32x256xf32>
    %cst_11 = arith.constant 0.239712775 : f32
    %33 = vector.broadcast %cst_11 : f32 to vector<32x256xf32>
    %34 = arith.subf %21, %33 : vector<32x256xf32>
    %35 = arith.select %32, %30, %34 : vector<32x256xi1>, vector<32x256xf32>
    %c0_12 = arith.constant 0 : index
    %c0_13 = arith.constant 0 : index
    %36 = vector.load %arg4[%c0_12, %c0_13] : memref<32x1xi32, #tpu.memory_space<vmem>>, vector<32x1xi32>
    %c256_i32 = arith.constant 256 : i32
    %37 = arith.muli %arg0, %c256_i32 : i32
    %38 = vector.broadcast %37 : i32 to vector<32x1xi32>
    %39 = arith.subi %36, %38 : vector<32x1xi32>
    %40 = tpu.iota {dimensions = array<i32: 1>} : vector<32x256xi32>
    %41 = vector.broadcast %39 : vector<32x1xi32> to vector<32x256xi32>
    %42 = arith.cmpi eq, %41, %40 : vector<32x256xi32>
    %43 = arith.select %42, %35, %21 : vector<32x256xi1>, vector<32x256xf32>
    %cst_14 = arith.constant 6.400000e+01 : f32
    %44 = vector.broadcast %cst_14 : f32 to vector<32x256xf32>
    %45 = arith.mulf %43, %44 : vector<32x256xf32>
    %c0_15 = arith.constant 0 : index
    %c0_16 = arith.constant 0 : index
    %46 = vector.load %arg5[%c0_15, %c0_16] : memref<32x256xf32, #tpu.memory_space<vmem>>, vector<32x256xf32>
    tpu.vector_store %arg5[%c0_15, %c0_16], %45 {strides = array<i32>} : memref<32x256xf32, #tpu.memory_space<vmem>>, vector<32x256xf32>,
    return
  }
  func.func @transform_0(%arg0: i32, %arg1: i32) -> (i32, i32) {
    %c0_i32 = arith.constant 0 : i32
    %c0_i32_0 = arith.constant 0 : i32
    %c0_i32_1 = arith.constant 0 : i32
    return %c0_i32, %c0_i32_0 : i32, i32
  }
  func.func @transform_1(%arg0: i32, %arg1: i32) -> (i32, i32) {
    %c0_i32 = arith.constant 0 : i32
    %c0_i32_0 = arith.constant 0 : i32
    return %arg0, %c0_i32 : i32, i32
  }
  func.func @transform_2(%arg0: i32, %arg1: i32) -> (i32, i32) {
    %c0_i32 = arith.constant 0 : i32
    %c0_i32_0 = arith.constant 0 : i32
    return %arg1, %c0_i32 : i32, i32
  }
  func.func @transform_3(%arg0: i32, %arg1: i32) -> (i32, i32) {
    %c0_i32 = arith.constant 0 : i32
    return %arg1, %arg0 : i32, i32
  }
}

</mosaic_0001>

<bundles_post_ra>
// kernel: tpu_custom_call.1
= control target key start
LH: loop header
LB: loop body
LE: loop exit
PB: predicated region body
PF: predicated region fallthrough
CT: control target
= control target key end

     0   :  { %8 = vsyncpa [#allocation4], 0  ;;  %s2061_s0 = inlined_call_operand.vmem [shape: f32[64,128], index: 0, kind: input, shape index: {}]   ;;  %s2062_s1 = inlined_call_operand.hbm [shape: f32[512,128], index: 1, kind: input, shape index: {}]   ;;  %s2063_s2 = inlined_call_operand.vmem [shape: s32[64,1], index: 2, kind: input, shape index: {}]   ;;  %s2064_s3 = inlined_call_operand.hbm [shape: f32[64,512], index: 3, kind: output, shape index: {}]  }
   0x1   :  { %10 = vsyncpa [#allocation4 + $0x1], 0 }
   0x2   :  { %11 = vsyncpa [#allocation5], 0 }
   0x3   :  { %13 = vsyncpa [#allocation5 + $0x1], 0  ;;  %s1357_s12 = smov 0   ;;  %s1359_s13 = smov 0  }
   0x4   :  { %s1361_s14 = smov 0   ;;  %s1363_s15 = smov 0  }
   0x5   :  { %s1365_s16 = smov 0   ;;  %s1367_s17 = smov 0  }
   0x6   :  { %s1369_s18 = smov 0   ;;  %s1371_s19 = smov 0  }
   0x7   :  { %s1373_s20 = smov 0   ;;  %s1375_s21 = smov 0  }
   0x8   :  { %s1377_s22 = smov 0  }
   0x9 LB: > { %s901_s23 = sadd.s32 4294967295, %s1327_s22   ;;  %s902_s24 = sadd.s32 4294967294, %s1327_s22   ;;  %s1327_s22 = sphi %s1377_s22, %s19_s22   ;;  %s1323_s21 = sphi %s1375_s21, %s2090_s21   ;;  %s1319_s20 = sphi %s1373_s20, %s2089_s20   ;;  %s1315_s19 = sphi %s1371_s19, %s2088_s19   ;;  %s1311_s18 = sphi %s1369_s18, %s2087_s18   ;;  %s1307_s17 = sphi %s1367_s17, %s2086_s17   ;;  %s1303_s16 = sphi %s1365_s16, %s2085_s16   ;;  %s1299_s15 = sphi %s1363_s15, %s2084_s15   ;;  %s1295_s14 = sphi %s1361_s14, %s2083_s14   ;;  %s1291_s13 = sphi %s1359_s13, %s2082_s13   ;;  %s1287_s12 = sphi %s1357_s12, %s2081_s12  }
   0xa   : > { %s28_s25 = sadd.s32 1, %s1319_s20  ;;  %s31_s26 = sadd.s32 1, %s1323_s21 }
   0xb   : > { %p29_p0 = scmp.ge.s32.totalorder %s28_s25, 2  ;;  %s59_s27 = sadd.s32 1, %s1307_s17 }
   0xc   : > { %p66_p1 = scmp.ne.s32.totalorder %s1307_s17, %s1303_s16  ;;  %p67_p2 = scmp.eq.s32.totalorder %s1327_s22, 0 }
   0xd   : > { %s2092_s25 = smov (%p29_p0, %s28_s25), 0  ;;  %s2094_s26 = smov (!%p29_p0, %s31_s26), %s1323_s21 }
   0xe   : > { %p1421_p3 = por %p67_p2, %p66_p1  ;;  %p72_p4 = scmp.ne.s32.totalorder %s1303_s16, %s1299_s15 }
   0xf   : > { %p33_p5 = scmp.ge.s32.totalorder %s2094_s26, 2  ;;  %p73_p6 = scmp.eq.s32.totalorder %s901_s23, 0 }
  0x10   : > { %s108_s29 = ssub.s32 %s1319_s20, %s2092_s25  ;;  %s113_s30 = sadd.s32 1, %s1295_s14 }
  0x11   : > { %s2096_s26 = smov (%p33_p5, %s2094_s26), 0  ;;  %p1431_p7 = por %p73_p6, %p72_p4 }
  0x12   : > { %2068 = sst [smem:[#allocation9_spill]] %s2096_s26  ;;  %p123_p8 = scmp.ne.s32.totalorder %s1295_s14, %s1291_s13 }
  0x13   : > { %s56_s5 = ssub.s32 %s1323_s21, %s2096_s26  ;;  %p124_p9 = scmp.eq.s32.totalorder %s901_s23, 3 }
  0x14   : > { %p57_p10 = scmp.eq.s32.totalorder %s56_s5, 0  ;;  %s110_s6 = sor.u32 %s108_s29, %s56_s5 }
  0x15   : > { %p111_p11 = scmp.eq.s32.totalorder %s110_s6, 0  ;;  %p1439_p12 = por %p124_p9, %p123_p8 }
  0x16   : > { %s1444_s8 = scalar_select %p57_p10, %s1307_s17, %s59_s27  }
  0x17   : > { %s2070_s7 = scalar_select %p1439_p12, 1, 0 }
  0x18   : > { %s1447_s9 = scalar_select %p111_p11, %s1295_s14, %s113_s30  }
  0x19   : > { %p129_p13 = scmp.ne.s32.totalorder %s1291_s13, %s1287_s12  ;;  %p130_p0 = scmp.eq.s32.totalorder %s902_s24, 3 }
  0x1a   : > { %p989_p1 = scmp.lt.s32.totalorder %s1327_s22, 4  ;;  %s153_s11 = sand.u32 1, %s1307_s17  }
  0x1b   : > { %p1452_p2 = por %p130_p0, %p129_p13  ;;  %s905_s15 = sshll.u32 %s153_s11, 8 }
  0x1c   : > { %s939_s23 = sshll.u32 %s1323_s21, 12  ;;  %s157_s27 = scalar_lea.vmem [#allocation3], %s905_s15 }
  0x1d   : > { %s2071_s10 = scalar_select %p1452_p2, 1, 0 }
  0x1e   : > { %s1461_s6 = scalar_lea.hbm %s2062_s1, %s939_s23  ;;  %s164_s30 = sshll.u32 %s157_s27, 4  ;;  %s1463_s30 = int_to_ptr.vmem [resolvable:$true] %s164_s30 }
  0x1f   : > { %p1467_p4 = pnand %p989_p1, %p1421_p3  ;;  %s1472_s26 = scalar_lea.sflag [#allocation4], %s153_s11 }
  0x20   : > { %s1175_s23 = scalar_lea.hbm %s1461_s6, 4096  ;;  %s1180_s28 = scalar_lea.hbm %s2062_s1, 8192 }
  0x21   : > { %p1176_p6 = scmp.ne.s32.totalorder %s1461_s6, %s1175_s23  ;;  %p1177_p8 = pneg %p1467_p4 }
  0x22   : > { %p1181_p3 = scmp.lt.u32.totalorder %s1461_s6, %s2062_s1  ;;  %p1182_p11 = scmp.lt.u32.totalorder %s1180_s28, %s1175_s23 }
  0x23   : > { %p1178_p9 = pnand %p1177_p8, %p1176_p6  ;;  %p1184_p0 = scmp.lt.u32.totalorder %s1175_s23, %s1461_s6 }
  0x24   : > { %p1183_p13 = por %p1182_p11, %p1181_p3 }
  0x25   : > { %p1179_p10 = pneg %p1178_p9 }
  0x26   : > { %p1185_p1 = por %p1184_p0, %p1183_p13 }
  0x28   : > { %p1186_p5 = pnand %p1185_p1, %p1179_p10 }
  0x2a   : > { %1189 = shalt.err (!%p1186_p5)
}
  0x2b   : > { %s1190_s11 = scalar_lea.vmem %s1463_s30, 4096  ;;  %s1329_s15 = smov [#allocation3]  }
  0x2c   : > { %p1191_p6 = scmp.ne.s32.totalorder %s1463_s30, %s1190_s11  ;;  %s1195_s29 = sshll.u32 %s1329_s15, 4  ;;  %s1196_s29 = int_to_ptr.vmem [resolvable:$false] %s1195_s29 }
  0x2d   : > { %s1197_s5 = scalar_lea.vmem %s1196_s29, 8192  ;;  %p1198_p12 = scmp.lt.s32.totalorder %s1463_s30, %s1196_s29 }
  0x2e   : > { %p1193_p9 = pnand %p1191_p6, %p1177_p8  ;;  %p1199_p3 = scmp.lt.s32.totalorder %s1197_s5, %s1190_s11 }
  0x30   : > { %p1194_p2 = pneg %p1193_p9  ;;  %p1200_p11 = por %p1199_p3, %p1198_p12 }
  0x32   : > { %p1201_p13 = pnand %p1200_p11, %p1194_p2 }
  0x34   : > { %1204 = shalt.err (!%p1201_p13)
}
  0x35   : > { %s1330_s23 = smov 128   ;;  %s1331_s28 = smov 8  }
  0x36   : > { %984 = dma.hbm_to_vmem [thread:$0]  (!%p1467_p4), %s1461_s6, 4096, %s1463_s30, %s1472_s26, %s1330_s23, %s1330_s23, %s1331_s28  }
  0x37   : > { %p181_p5 = scmp.lt.s32.totalorder %s1327_s22, 5  ;;  %p2073_p8 = scmp.ge.s32.totalorder %s1327_s22, 1 }
  0x39   : > { %p182_p10 = pnand %p2073_p8, %p181_p5 }
  0x3a   : > { %s187_s27 = sand.u32 (!%p182_p10), 1, %s1303_s16  }
  0x3b   : > { %185 = sbr.rel (%p182_p10) target bundleno = 736 (0x2e0), region = 32  ;;  %s909_s11 = sshll.u32 (!%p182_p10), %s187_s27, 8 }
  0x3c   : > { %s188_s15 = scalar_lea.sflag (!%p182_p10), [#allocation4], %s187_s27  ;;  %s1504_s29 = scalar_lea.vmem (!%p182_p10), [#allocation3], %s909_s11 }
  0x42   : > { %1278 = dma.done.wait (%p1431_p7), %s188_s15, 4096  }
  0x43   : > { %1280 = vsyncadd (%p1431_p7), %s188_s15, 4294963200  ;;  %s216_s26 = sand.u32 1, %s1291_s13   ;;  %s911_s6 = sshll.u32 %s1311_s18, 2 }
  0x44   : > { %s910_s30 = sshll.u32 %s216_s26, 6  ;;  %p221_p12 = scmp.lt.s32.totalorder %s911_s6, 7 }
  0x45   : > { %s1519_s27 = scalar_lea.vmem [#allocation6], %s910_s30  ;;  %p913_p2 = scmp.ne.s32.totalorder %s1311_s18, 0 }
  0x46   : > { %s2098_s6 = smov (!%p221_p12, %s911_s6), 7  ;;  %v1523_v0 = vld [vmem:[%s1504_s29 + $0x10] sm:$0xff] (!%p913_p2)  ;;  %v1526_v1 = vld [vmem:[%s1504_s29] sm:$0xff] (!%p913_p2)  ;;  %v1529_v2 = vld [vmem:[%s1504_s29 + $0x18] sm:$0xff] (!%p913_p2) }
  0x47   : > { %s912_s24 = sshll.u32 %s2098_s6, 3  ;;  %232 = sbr.rel (%p913_p2) target bundleno = 294 (0x126), region = 40  ;;  %v267_v3 = vmul.f32 (!%p913_p2), %v1523_v0, %v1523_v0  ;;  %v265_v4 = vmul.f32 (!%p913_p2), %v1526_v1, %v1526_v1  ;;  %v1536_v5 = vld [vmem:[%s1504_s29 + $0x8] sm:$0xff] (!%p913_p2)  ;;  %v268_v6 = vmul.f32 (!%p913_p2), %v1529_v2, %v1529_v2  ;;  %v1546_v9 = vld [vmem:[%s1504_s29 + $0x20] sm:$0xff] (!%p913_p2)  ;;  %v1553_v12 = vld [vmem:[%s1504_s29 + $0x38] sm:$0xff] (!%p913_p2) }
  0x48   : > { %s1517_s28 = scalar_lea.vmem %s2063_s2, %s912_s24  ;;  %v266_v7 = vmul.f32 (!%p913_p2), %v1536_v5, %v1536_v5  ;;  %v1543_v8 = vld [vmem:[%s1504_s29 + $0x28] sm:$0xff] (!%p913_p2)  ;;  %v269_v11 = vmul.f32 (!%p913_p2), %v1546_v9, %v1546_v9  ;;  %v1556_v13 = vld [vmem:[%s1504_s29 + $0x30] sm:$0xff] (!%p913_p2)  ;;  %v272_v14 = vmul.f32 (!%p913_p2), %v1553_v12, %v1553_v12  ;;  %v1566_v17 = vld [vmem:[%s1504_s29 + $0x40] sm:$0xff] (!%p913_p2) }
  0x49   : > { %301 = vadd.xlane.f32.xlu1 (!%p913_p2), %v267_v3  ;;  %297 = vadd.xlane.f32.xlu0 (!%p913_p2), %v265_v4  ;;  %v270_v10 = vmul.f32 (!%p913_p2), %v1543_v8, %v1543_v8  ;;  %v271_v15 = vmul.f32 (!%p913_p2), %v1556_v13, %v1556_v13  ;;  %v1563_v16 = vld [vmem:[%s1504_s29 + $0x48] sm:$0xff] (!%p913_p2)  ;;  %v273_v19 = vmul.f32 (!%p913_p2), %v1566_v17, %v1566_v17  ;;  %v1573_v20 = vld [vmem:[%s1504_s29 + $0x58] sm:$0xff] (!%p913_p2)  ;;  %v1576_v21 = vld [vmem:[%s1504_s29 + $0x50] sm:$0xff] (!%p913_p2) }
  0x4a   : > { %v274_v18 = vmul.f32 (!%p913_p2), %v1563_v16, %v1563_v16  ;;  %v276_v22 = vmul.f32 (!%p913_p2), %v1573_v20, %v1573_v20  ;;  %v275_v23 = vmul.f32 (!%p913_p2), %v1576_v21, %v1576_v21  ;;  %v1583_v24 = vld [vmem:[%s1504_s29 + $0x68] sm:$0xff] (!%p913_p2)  ;;  %v1586_v25 = vld [vmem:[%s1504_s29 + $0x60] sm:$0xff] (!%p913_p2)  ;;  %v1593_v28 = vld [vmem:[%s1504_s29 + $0x78] sm:$0xff] (!%p913_p2) }
  0x4b   : > { %v278_v26 = vmul.f32 (!%p913_p2), %v1583_v24, %v1583_v24  ;;  %v277_v27 = vmul.f32 (!%p913_p2), %v1586_v25, %v1586_v25  ;;  %v1596_v29 = vld [vmem:[%s1504_s29 + $0x70] sm:$0xff] (!%p913_p2)  ;;  %v280_v30 = vmul.f32 (!%p913_p2), %v1593_v28, %v1593_v28  ;;  %v1603_v32 = vld [vmem:[%s1504_s29 + $0x88] sm:$0xff] (!%p913_p2)  ;;  %v1606_v33 = vld [vmem:[%s1504_s29 + $0x80] sm:$0xff] (!%p913_p2) }
  0x4c   : > { %v279_v31 = vmul.f32 (!%p913_p2), %v1596_v29, %v1596_v29  ;;  %v282_v34 = vmul.f32 (!%p913_p2), %v1603_v32, %v1603_v32  ;;  %v281_v35 = vmul.f32 (!%p913_p2), %v1606_v33, %v1606_v33  ;;  %v1613_v36 = vld [vmem:[%s1504_s29 + $0x98] sm:$0xff] (!%p913_p2)  ;;  %v1616_v37 = vld [vmem:[%s1504_s29 + $0x90] sm:$0xff] (!%p913_p2)  ;;  %v1623_v40 = vld [vmem:[%s1504_s29 + $0xa8] sm:$0xff] (!%p913_p2) }
  0x4d   : > { %303 = vadd.xlane.f32.xlu1 (!%p913_p2), %v268_v6  ;;  %299 = vadd.xlane.f32.xlu0 (!%p913_p2), %v266_v7  ;;  %v284_v38 = vmul.f32 (!%p913_p2), %v1613_v36, %v1613_v36  ;;  %v283_v39 = vmul.f32 (!%p913_p2), %v1616_v37, %v1616_v37  ;;  %v1626_v41 = vld [vmem:[%s1504_s29 + $0xa0] sm:$0xff] (!%p913_p2)  ;;  %v286_v42 = vmul.f32 (!%p913_p2), %v1623_v40, %v1623_v40  ;;  %v1633_v44 = vld [vmem:[%s1504_s29 + $0xb8] sm:$0xff] (!%p913_p2)  ;;  %v1636_v45 = vld [vmem:[%s1504_s29 + $0xb0] sm:$0xff] (!%p913_p2) }
  0x4e   : > { %v285_v43 = vmul.f32 %v1626_v41, %v1626_v41  ;;  %v288_v46 = vmul.f32 %v1633_v44, %v1633_v44  ;;  %v287_v47 = vmul.f32 %v1636_v45, %v1636_v45  ;;  %v1643_v48 = vld [vmem:[%s1504_s29 + $0xc8] sm:$0xff]  ;;  %v1646_v49 = vld [vmem:[%s1504_s29 + $0xc0] sm:$0xff]  ;;  %v1653_v52 = vld [vmem:[%s1504_s29 + $0xd8] sm:$0xff] }
  0x4f   : > { %v290_v50 = vmul.f32 %v1643_v48, %v1643_v48  ;;  %v289_v51 = vmul.f32 %v1646_v49, %v1646_v49  ;;  %v1656_v53 = vld [vmem:[%s1504_s29 + $0xd0] sm:$0xff]  ;;  %v292_v54 = vmul.f32 %v1653_v52, %v1653_v52  ;;  %v1663_v56 = vld [vmem:[%s1504_s29 + $0xe8] sm:$0xff]  ;;  %v1666_v57 = vld [vmem:[%s1504_s29 + $0xe0] sm:$0xff] }
  0x50   : > { %v291_v55 = vmul.f32 %v1656_v53, %v1656_v53  ;;  %v294_v58 = vmul.f32 %v1663_v56, %v1663_v56  ;;  %v293_v59 = vmul.f32 %v1666_v57, %v1666_v57  ;;  %v1673_v60 = vld [vmem:[%s1504_s29 + $0xf8] sm:$0xff]  ;;  %v1676_v61 = vld [vmem:[%s1504_s29 + $0xf0] sm:$0xff] }
  0x51   : > { %307 = vadd.xlane.f32.xlu1 %v270_v10  ;;  %305 = vadd.xlane.f32.xlu0 %v269_v11  ;;  %v296_v62 = vmul.f32 %v1673_v60, %v1673_v60  ;;  %v295_v63 = vmul.f32 %v1676_v61, %v1676_v61 }
  0x55   : > { %311 = vadd.xlane.f32.xlu1 %v272_v14  ;;  %309 = vadd.xlane.f32.xlu0 %v271_v15 }
  0x59   : > { %315 = vadd.xlane.f32.xlu1 %v274_v18  ;;  %313 = vadd.xlane.f32.xlu0 %v273_v19 }
  0x5d   : > { %319 = vadd.xlane.f32.xlu1 %v276_v22  ;;  %317 = vadd.xlane.f32.xlu0 %v275_v23 }
  0x61   : > { %323 = vadd.xlane.f32.xlu1 %v278_v26  ;;  %321 = vadd.xlane.f32.xlu0 %v277_v27 }
  0x65   : > { %327 = vadd.xlane.f32.xlu1 %v280_v30  ;;  %325 = vadd.xlane.f32.xlu0 %v279_v31 }
  0x69   : > { %331 = vadd.xlane.f32.xlu1 %v282_v34  ;;  %329 = vadd.xlane.f32.xlu0 %v281_v35 }
  0x6d   : > { %335 = vadd.xlane.f32.xlu1 %v284_v38  ;;  %333 = vadd.xlane.f32.xlu0 %v283_v39 }
  0x71   : > { %339 = vadd.xlane.f32.xlu1 %v286_v42  ;;  %337 = vadd.xlane.f32.xlu0 %v285_v43 }
  0x75   : > { %343 = vadd.xlane.f32.xlu1 %v288_v46  ;;  %341 = vadd.xlane.f32.xlu0 %v287_v47 }
  0x79   : > { %347 = vadd.xlane.f32.xlu1 %v290_v50  ;;  %345 = vadd.xlane.f32.xlu0 %v289_v51 }
  0x7d   : > { %351 = vadd.xlane.f32.xlu1 %v292_v54  ;;  %349 = vadd.xlane.f32.xlu0 %v291_v55 }
  0x81   : > { %355 = vadd.xlane.f32.xlu1 %v294_v58  ;;  %353 = vadd.xlane.f32.xlu0 %v293_v59 }
  0x85   : > { %359 = vadd.xlane.f32.xlu1 %v296_v62  ;;  %357 = vadd.xlane.f32.xlu0 %v295_v63 }
  0xd6   : > { %v302_v3 = vpop.xlane.xlu1 %301  ;;  %v298_v4 = vpop.xlane.xlu0 %297 }
  0xd7   : > { %v363_v6 = vmax.f32 %v302_v3, 1e-24  ;;  %v361_v7 = vmax.f32 %v298_v4, 1e-24 }
  0xd9   : > { %1085 = vrsqrt.f32 %v363_v6 }
  0xda   : > { %v304_v10 = vpop.xlane.xlu1 %303  ;;  %v300_v11 = vpop.xlane.xlu0 %299  ;;  %1087 = vrsqrt.f32 %v361_v7 }
  0xdb   : > { %v364_v14 = vmax.f32 %v304_v10, 1e-24  ;;  %v362_v15 = vmax.f32 %v300_v11, 1e-24 }
  0xdd   : > { %1089 = vrsqrt.f32 %v364_v14 }
  0xde   : > { %1091 = vrsqrt.f32 %v362_v15  ;;  %v308_v18 = vpop.xlane.xlu1 %307  ;;  %v306_v19 = vpop.xlane.xlu0 %305 }
  0xdf   : > { %v366_v22 = vmax.f32 %v308_v18, 1e-24  ;;  %v365_v23 = vmax.f32 %v306_v19, 1e-24 }
  0xe1   : > { %1093 = vrsqrt.f32 %v366_v22 }
  0xe2   : > { %1095 = vrsqrt.f32 %v365_v23  ;;  %v312_v26 = vpop.xlane.xlu1 %311  ;;  %v310_v27 = vpop.xlane.xlu0 %309 }
  0xe3   : > { %v368_v30 = vmax.f32 %v312_v26, 1e-24  ;;  %v367_v31 = vmax.f32 %v310_v27, 1e-24  ;;  %v1086_v34 = vpop.eup %1085 }
  0xe4   : > { %v1088_v35 = vpop.eup %1087  ;;  %v427_v50 = vmul.f32 %v1086_v34, %v1523_v0 }
  0xe5   : > { %1097 = vrsqrt.f32 %v368_v30  ;;  %v425_v54 = vmul.f32 %v1088_v35, %v1526_v1 }
  0xe6   : > { %1099 = vrsqrt.f32 %v367_v31  ;;  %v316_v38 = vpop.xlane.xlu1 %315  ;;  %v314_v39 = vpop.xlane.xlu0 %313 }
  0xe7   : > { %v1090_v42 = vpop.eup %1089  ;;  %v370_v43 = vmax.f32 %v316_v38, 1e-24  ;;  %v369_v46 = vmax.f32 %v314_v39, 1e-24 }
  0xe8   : > { %v1092_v47 = vpop.eup %1091  ;;  %v428_v51 = vmul.f32 %v1090_v42, %v1529_v2 }
  0xe9   : > { %v426_v55 = vmul.f32 %v1092_v47, %v1536_v5  ;;  %1101 = vrsqrt.f32 %v370_v43 }
  0xea   : > { %v458_v58 = vpack.c.bf16 %v428_v51, %v427_v50  ;;  %1103 = vrsqrt.f32 %v369_v46  ;;  %v320_v59 = vpop.xlane.xlu1 %319  ;;  %v318_v62 = vpop.xlane.xlu0 %317 }
  0xeb   : > { %v1094_v63 = vpop.eup %1093  ;;  %v457_v3 = vpack.c.bf16 %v426_v55, %v425_v54  ;;  %v372_v4 = vmax.f32 %v320_v59, 1e-24  ;;  %v371_v6 = vmax.f32 %v318_v62, 1e-24 }
  0xec   : > { %v1096_v7 = vpop.eup %1095  ;;  %474 = vst [vmem:[#allocation2 + $0x8] sm:$0xff] %v458_v58  ;;  %v430_v10 = vmul.f32 %v1094_v63, %v1543_v8 }
  0xed   : > { %473 = vst [vmem:[#allocation2] sm:$0xff] %v457_v3  ;;  %v429_v0 = vmul.f32 %v1096_v7, %v1546_v9  ;;  %1105 = vrsqrt.f32 %v372_v4 }
  0xee   : > { %1107 = vrsqrt.f32 %v371_v6  ;;  %v324_v1 = vpop.xlane.xlu1 %323  ;;  %v322_v2 = vpop.xlane.xlu0 %321 }
  0xef   : > { %v1098_v5 = vpop.eup %1097  ;;  %v459_v11 = vpack.c.bf16 %v430_v10, %v429_v0  ;;  %v374_v14 = vmax.f32 %v324_v1, 1e-24  ;;  %v373_v15 = vmax.f32 %v322_v2, 1e-24 }
  0xf0   : > { %v1100_v18 = vpop.eup %1099  ;;  %v432_v19 = vmul.f32 %v1098_v5, %v1553_v12 }
  0xf1   : > { %475 = vst [vmem:[#allocation2 + $0x10] sm:$0xff] %v459_v11  ;;  %v431_v22 = vmul.f32 %v1100_v18, %v1556_v13  ;;  %1109 = vrsqrt.f32 %v374_v14 }
  0xf2   : > { %1111 = vrsqrt.f32 %v373_v15  ;;  %v328_v8 = vpop.xlane.xlu1 %327  ;;  %v326_v23 = vpop.xlane.xlu0 %325 }
  0xf3   : > { %v1102_v26 = vpop.eup %1101  ;;  %v460_v9 = vpack.c.bf16 %v432_v19, %v431_v22  ;;  %v376_v27 = vmax.f32 %v328_v8, 1e-24  ;;  %v375_v30 = vmax.f32 %v326_v23, 1e-24 }
  0xf4   : > { %v1104_v31 = vpop.eup %1103  ;;  %v434_v34 = vmul.f32 %v1102_v26, %v1563_v16 }
  0xf5   : > { %476 = vst [vmem:[#allocation2 + $0x18] sm:$0xff] %v460_v9  ;;  %v433_v35 = vmul.f32 %v1104_v31, %v1566_v17  ;;  %1113 = vrsqrt.f32 %v376_v27 }
  0xf6   : > { %1115 = vrsqrt.f32 %v375_v30  ;;  %v332_v12 = vpop.xlane.xlu1 %331  ;;  %v330_v38 = vpop.xlane.xlu0 %329 }
  0xf7   : > { %v1106_v39 = vpop.eup %1105  ;;  %v461_v13 = vpack.c.bf16 %v434_v34, %v433_v35  ;;  %v378_v42 = vmax.f32 %v332_v12, 1e-24  ;;  %v377_v43 = vmax.f32 %v330_v38, 1e-24 }
  0xf8   : > { %v1108_v46 = vpop.eup %1107  ;;  %v436_v47 = vmul.f32 %v1106_v39, %v1573_v20 }
  0xf9   : > { %477 = vst [vmem:[#allocation2 + $0x20] sm:$0xff] %v461_v13  ;;  %v435_v50 = vmul.f32 %v1108_v46, %v1576_v21  ;;  %1117 = vrsqrt.f32 %v378_v42 }
  0xfa   : > { %1119 = vrsqrt.f32 %v377_v43  ;;  %v336_v16 = vpop.xlane.xlu1 %335  ;;  %v334_v51 = vpop.xlane.xlu0 %333 }
  0xfb   : > { %v1110_v54 = vpop.eup %1109  ;;  %v462_v17 = vpack.c.bf16 %v436_v47, %v435_v50  ;;  %v380_v55 = vmax.f32 %v336_v16, 1e-24  ;;  %v379_v58 = vmax.f32 %v334_v51, 1e-24 }
  0xfc   : > { %v1112_v59 = vpop.eup %1111  ;;  %v438_v62 = vmul.f32 %v1110_v54, %v1583_v24 }
  0xfd   : > { %478 = vst [vmem:[#allocation2 + $0x28] sm:$0xff] %v462_v17  ;;  %v437_v63 = vmul.f32 %v1112_v59, %v1586_v25  ;;  %1121 = vrsqrt.f32 %v380_v55 }
  0xfe   : > { %1123 = vrsqrt.f32 %v379_v58  ;;  %v340_v20 = vpop.xlane.xlu1 %339  ;;  %v338_v3 = vpop.xlane.xlu0 %337 }
  0xff   : > { %v1114_v4 = vpop.eup %1113  ;;  %v463_v21 = vpack.c.bf16 %v438_v62, %v437_v63  ;;  %v382_v6 = vmax.f32 %v340_v20, 1e-24  ;;  %v381_v7 = vmax.f32 %v338_v3, 1e-24 }
 0x100   : > { %v1116_v10 = vpop.eup %1115  ;;  %v440_v0 = vmul.f32 %v1114_v4, %v1593_v28 }
 0x101   : > { %479 = vst [vmem:[#allocation2 + $0x30] sm:$0xff] %v463_v21  ;;  %v439_v1 = vmul.f32 %v1116_v10, %v1596_v29  ;;  %1125 = vrsqrt.f32 %v382_v6 }
 0x102   : > { %1127 = vrsqrt.f32 %v381_v7  ;;  %v344_v24 = vpop.xlane.xlu1 %343  ;;  %v342_v2 = vpop.xlane.xlu0 %341 }
 0x103   : > { %v1118_v5 = vpop.eup %1117  ;;  %v464_v25 = vpack.c.bf16 %v440_v0, %v439_v1  ;;  %v384_v11 = vmax.f32 %v344_v24, 1e-24  ;;  %v383_v14 = vmax.f32 %v342_v2, 1e-24 }
 0x104   : > { %v1120_v15 = vpop.eup %1119  ;;  %v442_v18 = vmul.f32 %v1118_v5, %v1603_v32 }
 0x105   : > { %480 = vst [vmem:[#allocation2 + $0x38] sm:$0xff] %v464_v25  ;;  %v441_v19 = vmul.f32 %v1120_v15, %v1606_v33  ;;  %1129 = vrsqrt.f32 %v384_v11 }
 0x106   : > { %1131 = vrsqrt.f32 %v383_v14  ;;  %v348_v28 = vpop.xlane.xlu1 %347  ;;  %v346_v22 = vpop.xlane.xlu0 %345 }
 0x107   : > { %v1122_v8 = vpop.eup %1121  ;;  %v465_v29 = vpack.c.bf16 %v442_v18, %v441_v19  ;;  %v386_v23 = vmax.f32 %v348_v28, 1e-24  ;;  %v385_v26 = vmax.f32 %v346_v22, 1e-24 }
 0x108   : > { %v1124_v9 = vpop.eup %1123  ;;  %v444_v27 = vmul.f32 %v1122_v8, %v1613_v36 }
 0x109   : > { %481 = vst [vmem:[#allocation2 + $0x40] sm:$0xff] %v465_v29  ;;  %v443_v30 = vmul.f32 %v1124_v9, %v1616_v37  ;;  %1133 = vrsqrt.f32 %v386_v23 }
 0x10a   : > { %1135 = vrsqrt.f32 %v385_v26  ;;  %v352_v32 = vpop.xlane.xlu1 %351  ;;  %v350_v31 = vpop.xlane.xlu0 %349 }
 0x10b   : > { %v1126_v34 = vpop.eup %1125  ;;  %v466_v33 = vpack.c.bf16 %v444_v27, %v443_v30  ;;  %v388_v35 = vmax.f32 %v352_v32, 1e-24  ;;  %v387_v12 = vmax.f32 %v350_v31, 1e-24 }
 0x10c   : > { %v1128_v38 = vpop.eup %1127  ;;  %v446_v39 = vmul.f32 %v1126_v34, %v1623_v40 }
 0x10d   : > { %482 = vst [vmem:[#allocation2 + $0x48] sm:$0xff] %v466_v33  ;;  %v445_v13 = vmul.f32 %v1128_v38, %v1626_v41  ;;  %1137 = vrsqrt.f32 %v388_v35 }
 0x10e   : > { %1139 = vrsqrt.f32 %v387_v12  ;;  %v356_v36 = vpop.xlane.xlu1 %355  ;;  %v354_v42 = vpop.xlane.xlu0 %353 }
 0x10f   : > { %v1130_v43 = vpop.eup %1129  ;;  %v467_v37 = vpack.c.bf16 %v446_v39, %v445_v13  ;;  %v390_v46 = vmax.f32 %v356_v36, 1e-24  ;;  %v389_v47 = vmax.f32 %v354_v42, 1e-24 }
 0x110   : > { %v1132_v50 = vpop.eup %1131  ;;  %v448_v16 = vmul.f32 %v1130_v43, %v1633_v44 }
 0x111   : > { %483 = vst [vmem:[#allocation2 + $0x50] sm:$0xff] %v467_v37  ;;  %v447_v51 = vmul.f32 %v1132_v50, %v1636_v45  ;;  %1141 = vrsqrt.f32 %v390_v46 }
 0x112   : > { %1143 = vrsqrt.f32 %v389_v47  ;;  %v360_v40 = vpop.xlane.xlu1 %359  ;;  %v358_v54 = vpop.xlane.xlu0 %357 }
 0x113   : > { %v1134_v17 = vpop.eup %1133  ;;  %v468_v41 = vpack.c.bf16 %v448_v16, %v447_v51  ;;  %v392_v55 = vmax.f32 %v360_v40, 1e-24  ;;  %v391_v58 = vmax.f32 %v358_v54, 1e-24 }
 0x114   : > { %v1136_v59 = vpop.eup %1135  ;;  %v450_v62 = vmul.f32 %v1134_v17, %v1643_v48 }
 0x115   : > { %484 = vst [vmem:[#allocation2 + $0x58] sm:$0xff] %v468_v41  ;;  %v449_v63 = vmul.f32 %v1136_v59, %v1646_v49  ;;  %1145 = vrsqrt.f32 %v392_v55 }
 0x116   : > { %1147 = vrsqrt.f32 %v391_v58 }
 0x117   : > { %v1138_v44 = vpop.eup %1137  ;;  %v469_v20 = vpack.c.bf16 %v450_v62, %v449_v63 }
 0x118   : > { %v1140_v3 = vpop.eup %1139  ;;  %v452_v45 = vmul.f32 %v1138_v44, %v1653_v52 }
 0x119   : > { %485 = vst [vmem:[#allocation2 + $0x60] sm:$0xff] %v469_v20  ;;  %v451_v4 = vmul.f32 %v1140_v3, %v1656_v53 }
 0x11b   : > { %v1142_v21 = vpop.eup %1141  ;;  %v470_v6 = vpack.c.bf16 %v452_v45, %v451_v4 }
 0x11c   : > { %v1144_v7 = vpop.eup %1143  ;;  %v454_v10 = vmul.f32 %v1142_v21, %v1663_v56 }
 0x11d   : > { %486 = vst [vmem:[#allocation2 + $0x68] sm:$0xff] %v470_v6  ;;  %v453_v48 = vmul.f32 %v1144_v7, %v1666_v57 }
 0x11f   : > { %v1146_v0 = vpop.eup %1145  ;;  %v471_v49 = vpack.c.bf16 %v454_v10, %v453_v48 }
 0x120   : > { %v1148_v1 = vpop.eup %1147  ;;  %v456_v24 = vmul.f32 %v1146_v0, %v1673_v60 }
 0x121   : > { %487 = vst [vmem:[#allocation2 + $0x70] sm:$0xff] %v471_v49  ;;  %v455_v2 = vmul.f32 %v1148_v1, %v1676_v61 }
 0x123   : > { %v472_v52 = vpack.c.bf16 %v456_v24, %v455_v2 }
 0x125   : > { %488 = vst [vmem:[#allocation2 + $0x78] sm:$0xff] %v472_v52 }
 0x126 PF: > { %s914_s4 = sshll.u32 %s1311_s18, 5  ;;  %v529_v53 = vld [vmem:[#allocation2 + $0x40] sm:$0xff]  ;;  %v530_v25 = vld [vmem:[#allocation2 + $0x48] sm:$0xff]  ;;  %v531_v28 = vld [vmem:[#allocation2 + $0x50] sm:$0xff]  ;;  %s931_s6 = sshll.u32 %s1315_s19, 8  ;;  %v1332_v33 = vmov 0  }
 0x127   : > { %v521_v5 = vld [vmem:[#allocation2] sm:$0xff]  ;;  %s490_s29 = scalar_lea.vmem %s2061_s0, %s914_s4  ;;  %941 = vmatprep.subr.bf16.mxu0 %v529_v53  ;;  %961 = vmatprep.subr.bf16.mxu1 %v529_v53  ;;  %v522_v19 = vld [vmem:[#allocation2 + $0x8] sm:$0xff]  ;;  %v523_v22 = vld [vmem:[#allocation2 + $0x10] sm:$0xff]  ;;  %v731_v31 = vstv %s931_s6  ;;  %s934_s30 = sshll.u32 %s1315_s19, 1 }
 0x128   : > { %v1718_v56 = vld [vmem:[%s490_s29 + $0x10] sm:$0xff]  ;;  %v1720_v57 = vld [vmem:[%s490_s29] sm:$0xff]  ;;  %v1722_v60 = vld [vmem:[%s490_s29 + $0x18] sm:$0xff]  ;;  %942 = vmatpush3.bf16.xpose.msra.mxu0 %v521_v5  ;;  %969 = vmatpush3.bf16.xpose.msra.mxu1 %v521_v5  ;;  %s940_s24 = sshll.u32 %s1311_s18, 4  ;;  %s800_s19 = sshll.u32 %s1519_s27, 4  ;;  %s1988_s19 = int_to_ptr.vmem [resolvable:$true] %s800_s19 }
 0x129   : > { %v497_v61 = vmul.f32 %v1718_v56, %v1718_v56  ;;  %v495_v11 = vmul.f32 %v1720_v57, %v1720_v57  ;;  %v1728_v14 = vld [vmem:[%s490_s29 + $0x8] sm:$0xff]  ;;  %943 = vmatprep.subr.bf16.mxu0 %v530_v25  ;;  %962 = vmatprep.subr.bf16.mxu1 %v530_v25  ;;  %v498_v15 = vmul.f32 %v1722_v60, %v1722_v60  ;;  %v532_v8 = vld [vmem:[#allocation2 + $0x58] sm:$0xff]  ;;  %v533_v23 = vld [vmem:[#allocation2 + $0x60] sm:$0xff]  ;;  %s797_s18 = sadd.s32 %s940_s24, %s934_s30  ;;  %s2000_s11 = scalar_lea.sflag [#allocation5], %s216_s26 }
 0x12a   : > { %v496_v18 = vmul.f32 %v1728_v14, %v1728_v14  ;;  %v524_v29 = vld [vmem:[#allocation2 + $0x18] sm:$0xff]  ;;  %v525_v26 = vld [vmem:[#allocation2 + $0x20] sm:$0xff]  ;;  %v534_v9 = vld [vmem:[#allocation2 + $0x68] sm:$0xff]  ;;  %1150 = vset.pattern.permute.xlu1 %v1332_v33  ;;  %1149 = vset.pattern.permute.xlu0 %v1332_v33  ;;  %s936_s5 = sshll.u32 %s797_s18, 7  ;;  %s1205_s15 = scalar_lea.vmem %s1988_s19, 1024 }
 0x12b   : > { %503 = vadd.xlane.f32.xlu1 %v497_v61  ;;  %499 = vadd.xlane.f32.xlu0 %v495_v11  ;;  %v526_v27 = vld [vmem:[#allocation2 + $0x28] sm:$0xff]  ;;  %v535_v30 = vld [vmem:[#allocation2 + $0x70] sm:$0xff]  ;;  %v726_v34 = vld [vmem:[%s1517_s28] sm:$0xff]  ;;  %s1994_s4 = scalar_lea.hbm %s2064_s3, %s936_s5  ;;  %p1206_p7 = scmp.ne.s32.totalorder %s1988_s19, %s1205_s15 }
 0x12c   : > { %v727_v32 = vld [vmem:[%s1517_s28 + $0x8] sm:$0xff]  ;;  %v728_v12 = vld [vmem:[%s1517_s28 + $0x10] sm:$0xff]  ;;  %v732_v38 = vsub.s32 %v726_v34, %v731_v31  ;;  %v536_v13 = vld [vmem:[#allocation2 + $0x78] sm:$0xff]  ;;  %p2078_p4 = scmp.ne.s32.totalorder %s2070_s7, 0  ;;  %s1333_s29 = smov [#allocation6]  }
 0x12d   : > { %v733_v35 = vsub.s32 %v727_v32, %v731_v31  ;;  %v527_v39 = vld [vmem:[#allocation2 + $0x30] sm:$0xff]  ;;  %v734_v36 = vsub.s32 %v728_v12, %v731_v31  ;;  %v729_v42 = vld [vmem:[%s1517_s28 + $0x18] sm:$0xff]  ;;  %s1209_s6 = sshll.u32 %s1333_s29, 4  ;;  %s1210_s6 = int_to_ptr.vmem [resolvable:$false] %s1209_s6 }
 0x12e   : > { %v735_v43 = vsub.s32 %v729_v42, %v731_v31  ;;  %v528_v37 = vld [vmem:[#allocation2 + $0x38] sm:$0xff]  ;;  %p1207_p0 = pnand %p1206_p7, %p2078_p4  ;;  %s1211_s30 = scalar_lea.vmem %s1210_s6, 2048 }
 0x12f   : > { %505 = vadd.xlane.f32.xlu1 %v498_v15  ;;  %501 = vadd.xlane.f32.xlu0 %v496_v18  ;;  %p1212_p6 = scmp.lt.s32.totalorder %s1988_s19, %s1210_s6  ;;  %p1213_p9 = scmp.lt.s32.totalorder %s1211_s30, %s1205_s15 }
 0x130   : > { %944 = vmatpush3.bf16.xpose.msra.mxu0 %v522_v19  ;;  %970 = vmatpush3.bf16.xpose.msra.mxu1 %v522_v19  ;;  %p1208_p1 = pneg %p1207_p0 }
 0x131   : > { %945 = vmatprep.subr.bf16.mxu0 %v531_v28  ;;  %963 = vmatprep.subr.bf16.mxu1 %v531_v28  ;;  %p1214_p3 = por %p1213_p9, %p1212_p6 }
 0x133   : > { %p1215_p11 = pnand %p1214_p3, %p1208_p1 }
 0x138   : > { %946 = vmatpush3.bf16.xpose.msra.mxu0 %v523_v22  ;;  %971 = vmatpush3.bf16.xpose.msra.mxu1 %v523_v22 }
 0x139   : > { %947 = vmatprep.subr.bf16.mxu0 %v532_v8  ;;  %964 = vmatprep.subr.bf16.mxu1 %v532_v8 }
 0x140   : > { %948 = vmatpush3.bf16.xpose.msra.mxu0 %v524_v29  ;;  %972 = vmatpush3.bf16.xpose.msra.mxu1 %v524_v29 }
 0x141   : > { %949 = vmatprep.subr.bf16.mxu0 %v533_v23  ;;  %965 = vmatprep.subr.bf16.mxu1 %v533_v23 }
 0x142   : > { %743 = vperm.xlu1 %1150, %v733_v35  }
 0x145   : > { %740 = vperm.xlu0 %1149, %v732_v38  }
 0x146   : > { %746 = vperm.xlu1 %1150, %v734_v36  }
 0x148   : > { %950 = vmatpush3.bf16.xpose.msra.mxu0 %v525_v26  ;;  %973 = vmatpush3.bf16.xpose.msra.mxu1 %v525_v26 }
 0x149   : > { %951 = vmatprep.subr.bf16.mxu0 %v534_v9  ;;  %966 = vmatprep.subr.bf16.mxu1 %v534_v9 }
 0x14a   : > { %749 = vperm.xlu1 %1150, %v735_v43  }
 0x150   : > { %952 = vmatpush3.bf16.xpose.msra.mxu0 %v526_v27  ;;  %974 = vmatpush3.bf16.xpose.msra.mxu1 %v526_v27 }
 0x151   : > { %953 = vmatprep.subr.bf16.mxu0 %v535_v30  ;;  %967 = vmatprep.subr.bf16.mxu1 %v535_v30 }
 0x158   : > { %954 = vmatpush3.bf16.xpose.msra.mxu0 %v527_v39  ;;  %975 = vmatpush3.bf16.xpose.msra.mxu1 %v527_v39 }
 0x159   : > { %955 = vmatprep.subr.bf16.mxu0 %v536_v13  ;;  %968 = vmatprep.subr.bf16.mxu1 %v536_v13 }
 0x160   : > { %956 = vmatpush3.bf16.xpose.msra.mxu0 %v528_v37  ;;  %976 = vmatpush3.bf16.xpose.msra.mxu1 %v528_v37 }
 0x1b8   : > { %v504_v46 = vpop.xlane.xlu1 %503  ;;  %v500_v47 = vpop.xlane.xlu0 %499 }
 0x1b9   : > { %v509_v50 = vmax.f32 %v504_v46, 1e-24  ;;  %v507_v16 = vmax.f32 %v500_v47, 1e-24 }
 0x1bb   : > { %1151 = vrsqrt.f32 %v509_v50 }
 0x1bc   : > { %v506_v51 = vpop.xlane.xlu1 %505  ;;  %v502_v40 = vpop.xlane.xlu0 %501  ;;  %1153 = vrsqrt.f32 %v507_v16 }
 0x1bd   : > { %v510_v54 = vmax.f32 %v506_v51, 1e-24  ;;  %v508_v17 = vmax.f32 %v502_v40, 1e-24 }
 0x1bf   : > { %1155 = vrsqrt.f32 %v510_v54 }
 0x1c0   : > { %1157 = vrsqrt.f32 %v508_v17 }
 0x1c1   : > { %v1788_v27 = vpop.permute.xlu1 %743 }
 0x1c5   : > { %v1152_v41 = vpop.eup %1151  ;;  %v1822_v36 = vpop.permute.xlu1 %746 }
 0x1c6   : > { %v1154_v55 = vpop.eup %1153  ;;  %v517_v62 = vmul.f32 %v1152_v41, %v1718_v56  ;;  %v736_v56 = vlaneseq }
 0x1c7   : > { %v515_v44 = vmul.f32 %v1154_v55, %v1720_v57 }
 0x1c8   : > { %v1777_v8 = vand.u32 127, %v736_v56 }
 0x1c9   : > { %v1156_v58 = vpop.eup %1155 }
 0x1ca   : > { %v1158_v59 = vpop.eup %1157  ;;  %v518_v63 = vmul.f32 %v1156_v58, %v1722_v60  ;;  %v1799_v34 = vadd.s32 128, %v1777_v8  ;;  %vm753_vm14 = vcmp.eq.s32.totalorder %v1788_v27, %v1777_v8 }
 0x1cb   : > { %v516_v20 = vmul.f32 %v1158_v59, %v1728_v14 }
 0x1cc   : > { %v520_v3 = vpack.c.bf16 %v518_v63, %v517_v62 }
 0x1cd   : > { %v519_v45 = vpack.c.bf16 %v516_v20, %v515_v44  ;;  %v1865_v44 = vpop.permute.xlu1 %749 }
 0x1ce   : > { %959 = vmatprep.mubr.bf16.mxu1 %v520_v3 }
 0x1cf   : > { %957 = vmatprep.mubr.bf16.mxu0 %v519_v45  ;;  %960 = vmatmul.mubr.bf16.vlgmr.msra.gmra.mrb[0].mxu1 %v520_v3 }
 0x1d0   : > { %958 = vmatmul.mubr.bf16.vlgmr.msra.gmra.mrb[0].mxu0 %v519_v45 }
 0x2a2   : > { %v581_v4 = vpop.f32.mrb[0].mxu1 }
 0x2a3   : > { %v571_v21 = vpop.f32.mrb[0].mxu0  ;;  %v1743_v6 = vclamps-f32 %v581_v4, 0.999999  ;;  %v583_v7 = vpop.f32.mrb[1].mxu1 }
 0x2a4   : > { %v573_v10 = vpop.f32.mrb[1].mxu0  ;;  %v1745_v48 = vclamps-f32 %v583_v7, 0.999999  ;;  %v585_v0 = vpop.f32.mrb[2].mxu1  ;;  %v1747_v49 = vclamps-f32 %v571_v21, 0.999999 }
 0x2a5   : > { %v610_v1 = vmul.f32 %v1743_v6, %v1743_v6  ;;  %v575_v24 = vpop.f32.mrb[2].mxu0  ;;  %v1751_v2 = vclamps-f32 %v585_v0, 0.999999  ;;  %v587_v52 = vpop.f32.mrb[3].mxu1  ;;  %v1759_v60 = vclamps-f32 %v573_v10, 0.999999 }
 0x2a6   : > { %v1753_v53 = vclamps-f32 %v575_v24, 0.999999  ;;  %v577_v5 = vpop.f32.mrb[3].mxu0  ;;  %v1755_v25 = vclamps-f32 %v587_v52, 0.999999  ;;  %v611_v61 = vmul.f32 %v1745_v48, %v1745_v48  ;;  %v606_v28 = vmul.f32 %v1747_v49, %v1747_v49 }
 0x2a7   : > { %v1757_v57 = vsub.f32 1.0, %v610_v1  ;;  %v1763_v11 = vclamps-f32 %v577_v5, 0.999999  ;;  %v612_v15 = vmul.f32 %v1751_v2, %v1751_v2  ;;  %v607_v29 = vmul.f32 %v1759_v60, %v1759_v60 }
 0x2a8   : > { %v608_v14 = vmul.f32 %v1753_v53, %v1753_v53  ;;  %v613_v19 = vmul.f32 %v1755_v25, %v1755_v25  ;;  %v1781_v23 = vsub.f32 1.0, %v611_v61  ;;  %v1794_v32 = vsub.f32 1.0, %v606_v28 }
 0x2a9   : > { %v609_v18 = vmul.f32 %v1763_v11, %v1763_v11  ;;  %1159 = vrsqrt.f32 %v1757_v57  ;;  %v1786_v9 = vsub.f32 1.0, %v612_v15  ;;  %v1796_v31 = vsub.f32 1.0, %v607_v29 }
 0x2aa   : > { %v1775_v22 = vsub.f32 1.0, %v608_v14  ;;  %v1791_v30 = vsub.f32 1.0, %v613_v19  ;;  %v1803_v33 = vmul.f32 0.87758255, %v1763_v11  ;;  %v1806_v35 = vmul.f32 0.87758255, %v1753_v53 }
 0x2ab   : > { %v1783_v26 = vsub.f32 1.0, %v609_v18  ;;  %v1809_v12 = vadd.f32 -0.23971277, %v1753_v53  ;;  %v1820_v13 = vadd.f32 -0.23971277, %v1763_v11  ;;  %vm652_vm4 = vcmp.eq.f32.partialorder %v1757_v57, inf }
 0x2ac   : > { %1161 = vrsqrt.f32 %v1775_v22  ;;  %vm638_vm0 = vcmp.eq.f32.partialorder %v1775_v22, inf  ;;  %vm640_vm1 = vcmp.eq.f32.partialorder %v1775_v22, 0.0  ;;  %v641_v38 = vand.u32 2147483648, %v1775_v22 }
 0x2ad   : > { %1163 = vrsqrt.f32 %v1783_v26  ;;  %vm645_vm2 = vcmp.eq.f32.partialorder %v1783_v26, inf  ;;  %vm647_vm3 = vcmp.eq.f32.partialorder %v1783_v26, 0.0  ;;  %v648_v39 = vand.u32 2147483648, %v1783_v26 }
 0x2ae   : > { %1165 = vrsqrt.f32 %v1781_v23  ;;  %vm654_vm5 = vcmp.eq.f32.partialorder %v1757_v57, 0.0  ;;  %v655_v42 = vand.u32 2147483648, %v1757_v57  ;;  %vm659_vm6 = vcmp.eq.f32.partialorder %v1781_v23, inf }
 0x2af   : > { %1167 = vrsqrt.f32 %v1786_v9  ;;  %vm661_vm7 = vcmp.eq.f32.partialorder %v1781_v23, 0.0  ;;  %v662_v43 = vand.u32 2147483648, %v1781_v23  ;;  %v682_v37 = vmul.f32 0.87758255, %v1743_v6 }
 0x2b0   : > { %1169 = vrsqrt.f32 %v1791_v30  ;;  %v1832_v46 = vmul.f32 0.87758255, %v1745_v48  ;;  %vm706_vm8 = vcmp.gt.f32.partialorder %v1743_v6, -0.87758255  ;;  %v927_v50 = vadd.f32 -0.23971277, %v1743_v6 }
 0x2b1   : > { %v1837_v16 = vadd.f32 -0.23971277, %v1745_v48  ;;  %1171 = vrsqrt.f32 %v1794_v32  ;;  %vm704_vm9 = vcmp.gt.f32.partialorder %v1753_v53, -0.87758255  ;;  %vm666_vm11 = vcmp.eq.f32.partialorder %v1786_v9, inf }
 0x2b2   : > { %vm668_vm12 = vcmp.eq.f32.partialorder %v1786_v9, 0.0  ;;  %1173 = vrsqrt.f32 %v1796_v31  ;;  %v669_v41 = vand.u32 2147483648, %v1786_v9  ;;  %vm673_vm15 = vcmp.eq.f32.partialorder %v1791_v30, inf }
 0x2b3   : > { %v1160_v47 = vpop.eup %1159  ;;  %v676_v55 = vand.u32 2147483648, %v1791_v30  ;;  %vm675_vm13 = vcmp.eq.f32.partialorder %v1791_v30, 0.0  ;;  %v684_v62 = vmul.f32 0.87758255, %v1751_v2  ;;  %v1863_v63 = vmul.f32 0.87758255, %v1755_v25 }
 0x2b4   : > { %v651_v40 = vmul.f32 %v1160_v47, %v1757_v57  ;;  %vm707_vm10 = vcmp.gt.f32.partialorder %v1745_v48, -0.87758255  ;;  %v929_v4 = vadd.f32 -0.23971277, %v1751_v2  ;;  %v1875_v21 = vadd.f32 -0.23971277, %v1755_v25 }
 0x2b5   : > { %v627_v61 = vand.u32 2147483648, %v1794_v32 }
 0x2b6   : > { %v1162_v51 = vpop.eup %1161  ;;  %v653_v59 = vsel %vm652_vm4, %v1757_v57, %v651_v40  ;;  %vm708_vm4 = vcmp.gt.f32.partialorder %v1751_v2, -0.87758255 }
 0x2b7   : > { %v1164_v54 = vpop.eup %1163  ;;  %v637_v17 = vmul.f32 %v1162_v51, %v1775_v22  ;;  %v656_v45 = vsel %vm654_vm5, %v655_v42, %v653_v59  ;;  %vm709_vm5 = vcmp.gt.f32.partialorder %v1755_v25, -0.87758255 }
 0x2b8   : > { %v644_v58 = vmul.f32 %v1164_v54, %v1783_v26  ;;  %v1166_v20 = vpop.eup %1165  ;;  %v690_v24 = vmul.f32 0.47942555, %v656_v45  ;;  %v678_v45 = vmul.f32 0.87758255, %v1747_v49 }
 0x2b9   : > { %v639_v3 = vsel %vm638_vm0, %v1775_v22, %v637_v17  ;;  %v1168_v7 = vpop.eup %1167  ;;  %v658_v1 = vmul.f32 %v1166_v20, %v1781_v23  ;;  %vm756_vm0 = vcmp.eq.s32.totalorder %v1822_v36, %v1799_v34 }
 0x2ba   : > { %v642_v10 = vsel %vm640_vm1, %v641_v38, %v639_v3  ;;  %v646_v0 = vsel %vm645_vm2, %v1783_v26, %v644_v58  ;;  %v1170_v52 = vpop.eup %1169  ;;  %v665_v57 = vmul.f32 %v1168_v7, %v1786_v9  ;;  %vm757_vm1 = vcmp.eq.s32.totalorder %v1865_v44, %v1777_v8 }
 0x2bb   : > { %v649_v5 = vsel %vm647_vm3, %v648_v39, %v646_v0  ;;  %v688_v56 = vmul.f32 0.47942555, %v642_v10  ;;  %v660_v15 = vsel %vm659_vm6, %v1781_v23, %v658_v1  ;;  %v698_v18 = vsub.f32 %v682_v37, %v690_v24  ;;  %v1172_v23 = vpop.eup %1171 }
 0x2bc   : > { %v689_v14 = vmul.f32 0.47942555, %v649_v5  ;;  %v672_v19 = vmul.f32 %v1170_v52, %v1791_v30  ;;  %vm626_vm3 = vcmp.eq.f32.partialorder %v1794_v32, 0.0  ;;  %v663_v22 = vsel %vm661_vm7, %v662_v43, %v660_v15  ;;  %v1174_v37 = vpop.eup %1173 }
 0x2bd   : > { %v696_v28 = vsub.f32 %v1806_v35, %v688_v56  ;;  %v667_v29 = vsel %vm666_vm11, %v1786_v9, %v665_v57  ;;  %vm631_vm2 = vcmp.eq.f32.partialorder %v1796_v31, inf  ;;  %v691_v38 = vmul.f32 0.47942555, %v663_v22 }
 0x2be   : > { %v697_v26 = vsub.f32 %v1803_v33, %v689_v14  ;;  %v722_v39 = vsel %vm706_vm8, %v698_v18, %v927_v50  ;;  %v670_v35 = vsel %vm668_vm12, %v669_v41, %v667_v29  ;;  %vm758_vm6 = vcmp.eq.s32.totalorder %v1865_v44, %v1799_v34 }
 0x2bf   : > { %v720_v42 = vsel %vm704_vm9, %v696_v28, %v1809_v12  ;;  %vm2074_vm7 = vcmp.eq.s32.totalorder %v1822_v36, %v1777_v8  ;;  %v674_v43 = vsel %vm673_vm15, %v1791_v30, %v672_v19  ;;  %v692_v9 = vmul.f32 0.47942555, %v670_v35 }
 0x2c0   : > { %v763_v33 = vsel %vm2074_vm7, %v722_v39, %v1743_v6  ;;  %vm2075_vm8 = vcmp.gt.f32.partialorder %v1763_v11, -0.87758255  ;;  %v761_v12 = vsel %vm753_vm14, %v720_v42, %v1753_v53  ;;  %v699_v50 = vsub.f32 %v1832_v46, %v691_v38 }
 0x2c1   : > { %v721_v47 = vsel %vm2075_vm8, %v697_v26, %v1820_v13  ;;  %v771_v6 = vmul.f32 64.0, %v763_v33  ;;  %vm2076_vm9 = vcmp.eq.s32.totalorder %v1788_v27, %v1799_v34  ;;  %v769_v40 = vmul.f32 64.0, %v761_v12 }
 0x2c2   : > { %v762_v51 = vsel %vm2076_vm9, %v721_v47, %v1763_v11  ;;  %v677_v13 = vsel %vm675_vm13, %v676_v55, %v674_v43  ;;  %v700_v54 = vsub.f32 %v684_v62, %v692_v9  ;;  %v723_v53 = vsel %vm707_vm10, %v699_v50, %v1837_v16 }
 0x2c3   : > { %v770_v17 = vmul.f32 64.0, %v762_v51  ;;  %779 = vst [vmem:[%s1519_s27 + $0x20] sm:$0xff] %v771_v6  ;;  %v693_v46 = vmul.f32 0.47942555, %v677_v13  ;;  %v623_v41 = vmul.f32 %v1172_v23, %v1794_v32  ;;  %777 = vst [vmem:[%s1519_s27 + $0x10] sm:$0xff] %v769_v40  ;;  %v764_v11 = vsel %vm756_vm0, %v723_v53, %v1745_v48 }
 0x2c4   : > { %v724_v27 = vsel %vm708_vm4, %v700_v54, %v929_v4  ;;  %v630_v30 = vmul.f32 %v1174_v37, %v1796_v31  ;;  %v634_v55 = vand.u32 2147483648, %v1796_v31  ;;  %v772_v16 = vmul.f32 64.0, %v764_v11 }
 0x2c5   : > { %778 = vst [vmem:[%s1519_s27 + $0x18] sm:$0xff] %v770_v17  ;;  %v701_v58 = vsub.f32 %v1863_v63, %v693_v46  ;;  %v765_v48 = vsel %vm757_vm1, %v724_v27, %v1751_v2  ;;  %vm2077_vm10 = vcmp.eq.f32.partialorder %v1794_v32, inf  ;;  %vm633_vm11 = vcmp.eq.f32.partialorder %v1796_v31, 0.0  ;;  %v741_v63 = vpop.permute.xlu0 %740 }
 0x2c6   : > { %v625_v36 = vsel %vm2077_vm10, %v1794_v32, %v623_v41  ;;  %v773_v59 = vmul.f32 64.0, %v765_v48  ;;  %v632_v20 = vsel %vm631_vm2, %v1796_v31, %v630_v30  ;;  %780 = vst [vmem:[%s1519_s27 + $0x28] sm:$0xff] %v772_v16  ;;  %v679_v31 = vmul.f32 0.87758255, %v1759_v60 }
 0x2c7   : > { %v628_v62 = vsel %vm626_vm3, %v627_v61, %v625_v36  ;;  %v725_v2 = vsel %vm709_vm5, %v701_v58, %v1875_v21  ;;  %v635_v3 = vsel %vm633_vm11, %v634_v55, %v632_v20  ;;  %v923_v1 = vadd.f32 -0.23971277, %v1747_v49 }
 0x2c8   : > { %v686_v4 = vmul.f32 0.47942555, %v628_v62  ;;  %v766_v32 = vsel %vm758_vm6, %v725_v2, %v1755_v25  ;;  %781 = vst [vmem:[%s1519_s27 + $0x30] sm:$0xff] %v773_v59  ;;  %v687_v7 = vmul.f32 0.47942555, %v635_v3  ;;  %vm751_vm12 = vcmp.eq.s32.totalorder %v741_v63, %v1777_v8 }
 0x2c9   : > { %v774_v10 = vmul.f32 64.0, %v766_v32  ;;  %vm702_vm13 = vcmp.gt.f32.partialorder %v1747_v49, -0.87758255  ;;  %v924_v44 = vadd.f32 -0.23971277, %v1759_v60  ;;  %vm752_vm14 = vcmp.eq.s32.totalorder %v741_v63, %v1799_v34 }
 0x2ca   : > { %v694_v0 = vsub.f32 %v678_v45, %v686_v4  ;;  %v695_v21 = vsub.f32 %v679_v31, %v687_v7  ;;  %vm703_vm15 = vcmp.gt.f32.partialorder %v1759_v60, -0.87758255 }
 0x2cb   : > { %782 = vst [vmem:[%s1519_s27 + $0x38] sm:$0xff] %v774_v10 }
 0x2cc   : > { %v718_v25 = vsel %vm702_vm13, %v694_v0, %v923_v1  ;;  %v719_v24 = vsel %vm703_vm15, %v695_v21, %v924_v44 }
 0x2cd   : > { %v759_v8 = vsel %vm751_vm12, %v718_v25, %v1747_v49  ;;  %v760_v52 = vsel %vm752_vm14, %v719_v24, %v1759_v60 }
 0x2ce   : > { %v767_v5 = vmul.f32 64.0, %v759_v8  ;;  %v768_v34 = vmul.f32 64.0, %v760_v52 }
 0x2d0   : > { %775 = vst [vmem:[%s1519_s27] sm:$0xff] %v767_v5  ;;  %776 = vst [vmem:[%s1519_s27 + $0x8] sm:$0xff] %v768_v34 }
 0x2d1   : > { %1218 = shalt.err (!%p1215_p11)
}
 0x2d2   : > { %s1219_s26 = scalar_lea.hbm %s1994_s4, 1024  ;;  %s1223_s18 = scalar_lea.hbm %s2064_s3, 4096 }
 0x2d3   : > { %p1220_p13 = scmp.ne.s32.totalorder %s1994_s4, %s1219_s26  ;;  %p1224_p10 = scmp.lt.u32.totalorder %s1994_s4, %s2064_s3 }
 0x2d4   : > { %p1225_p12 = scmp.lt.u32.totalorder %s1223_s18, %s1219_s26  ;;  %p1227_p7 = scmp.lt.u32.totalorder %s1219_s26, %s1994_s4 }
 0x2d5   : > { %p1221_p5 = pnand %p1220_p13, %p2078_p4 }
 0x2d6   : > { %p1226_p2 = por %p1225_p12, %p1224_p10 }
 0x2d7   : > { %p1222_p8 = pneg %p1221_p5 }
 0x2d8   : > { %p1228_p0 = por %p1227_p7, %p1226_p2 }
 0x2da   : > { %p1229_p1 = pnand %p1228_p0, %p1222_p8 }
 0x2dc   : > { %1232 = shalt.err (!%p1229_p1)
}
 0x2dd   : > { %s1334_s28 = smov 256   ;;  %s1335_s15 = smov 512  }
 0x2de   : > { %s1336_s29 = smov 16  }
 0x2df   : > { %979 = dma.vmem_to_hbm [thread:$0]  (%p2078_p4), %s1988_s19, 1024, %s1994_s4, %s2000_s11, %s1334_s28, %s1335_s15, %s1336_s29  }
 0x2e0 PF: > { %p990_p6 = scmp.ge.s32.totalorder %s1327_s22, 2  ;;  %s815_s6 = sand.u32 1, %s1287_s12  }
 0x2e1   : > { %p2079_p9 = scmp.ne.s32.totalorder %s2071_s10, 0  ;;  %s816_s30 = scalar_lea.sflag [#allocation5], %s815_s6 }
 0x2e3   : > { %p986_p3 = pnand %p990_p6, %p2079_p9 }
 0x2e5   : > { %1282 = dma.done.wait (!%p986_p3), %s816_s30, 1024  }
 0x2e6   : > { %1284 = vsyncadd (!%p986_p3), %s816_s30, 4294966272  ;;  %s19_s22 = sadd.s32 1, %s1327_s22   ;;  %s2080_s7 = sld [smem:[#allocation9_spill]] }
 0x2e7   : > { %p16_p11 = scmp.ge.s32.totalorder %s19_s22, 6   ;;  %s2081_s12 = smov %s1291_s13 }
 0x2e8   : > { %s2082_s13 = smov %s1295_s14  ;;  %s2083_s14 = smov %s1447_s9 }
 0x2e9   : > { %s2084_s15 = smov %s1303_s16  ;;  %s2085_s16 = smov %s1307_s17 }
 0x2ea   : > { %s2086_s17 = smov %s1444_s8  ;;  %s2087_s18 = smov %s1319_s20 }
 0x2eb   : > { %s2088_s19 = smov %s1323_s21  ;;  %s2089_s20 = smov %s2092_s25 }
 0x2ec   : > { %s2090_s21 = smov %s2080_s7  ;;  %18 = sbr.rel (!%p16_p11) target bundleno = 9 (0x9), region = 85 }
 0x2f3   :  { %821 = vsyncpa [#allocation4], 1 }
 0x2f4   :  { %823 = vsyncpa [#allocation4 + $0x1], 1 }
 0x2f5   :  { %824 = vsyncpa [#allocation5], 1 }
 0x2f6   :  { %826 = vsyncpa [#allocation5 + $0x1], 1 }

</bundles_post_ra>
